<compile_context>
chip_gen: v6e
topology: v6e:2x2x1
jax: 0.10.0
libtpu: 0.0.40
codegen_flags: <defaults>
</compile_context>

<pallas_src>
import math

import jax
import jax.numpy as jnp
from jax.experimental import pallas as pl
from jax.experimental.pallas import tpu as pltpu


# ----------------------------------------------------------------------------
# Default path: zero-cost view (exactly what torch.view does).
# ----------------------------------------------------------------------------
def pallas_reshape(x: jax.Array, outer_shape: tuple[int, ...]) -> jax.Array:
    """Equivalent of Reshape(outer_shape)(x): metadata-only, no kernel."""
    batch = x.shape[0]
    flat_features = math.prod(x.shape[1:])
    expected = math.prod(outer_shape)
    if flat_features != expected:
        raise ValueError(
            f"cannot view {x.shape} as ({batch}, {outer_shape}): "
            f"{flat_features} != {expected}"
        )
    # Pure metadata: row-major reshape == torch .view. Zero HBM traffic.
    return x.reshape(batch, *outer_shape)


# ----------------------------------------------------------------------------
# Optional path: materialized copy via a tiled, pipelined Pallas kernel.
# ----------------------------------------------------------------------------
def _copy_kernel(x_ref, o_ref):
    o_ref[...] = x_ref[...]


def _sublane_multiple(dtype) -> int:
    bits = jnp.dtype(dtype).itemsize * 8
    if bits >= 32:
        return 8
    if bits == 16:
        return 16
    return 32


def _lane_dense_factorization(total: int) -> tuple[int, int]:
    """Factor `total` elements into (rows, cols) with cols a big multiple of 128."""
    for c in (2048, 1024, 512, 256, 128):
        if total % c == 0:
            return total // c, c
    # Fallback: single row, full-extent block (relies on full-dim exemption).
    return 1, total


def _pick_tile_rows(rows: int, sublane: int, cols: int, itemsize: int,
                    max_tile_bytes: int) -> int:
    """Row count per tile: sublane-aligned, VMEM-capped, prefer even division."""
    if rows % sublane != 0:
        # Full-extent row block (block dim == array dim exemption).
        return rows
    cap = max(sublane, max_tile_bytes // (cols * itemsize))
    cap = min(rows, cap)
    cap = max(sublane, (cap // sublane) * sublane)
    t = cap
    while t > sublane and rows % t != 0:
        t -= sublane
    return t if rows % t == 0 else cap


def pallas_reshape_materialized(
    x: jax.Array,
    outer_shape: tuple[int, ...],
    *,
    donate_input: bool = False,
    max_tile_bytes: int = 2 << 20,  # 2 MiB/operand: safe on v5e/v6e/v7x VMEM
) -> jax.Array:
    """Reshape with an explicit, freshly materialized output buffer."""
    batch = x.shape[0]
    flat_features = math.prod(x.shape[1:])
    expected = math.prod(outer_shape)
    if flat_features != expected:
        raise ValueError(
            f"cannot view {x.shape} as ({batch}, {outer_shape}): "
            f"{flat_features} != {expected}"
        )

    total = batch * flat_features
    itemsize = jnp.dtype(x.dtype).itemsize

    # Lane-dense slab: fold batch into the row dim so tiny batches do not
    # waste sublanes, and keep the last dim a large multiple of 128.
    rows, cols = _lane_dense_factorization(total)
    slab = x.reshape(rows, cols)

    sublane = _sublane_multiple(x.dtype)
    tile_r = _pick_tile_rows(rows, sublane, cols, itemsize, max_tile_bytes)
    grid = (pl.cdiv(rows, tile_r),)

    out2d = pl.pallas_call(
        _copy_kernel,
        out_shape=jax.ShapeDtypeStruct((rows, cols), x.dtype),
        grid=grid,
        in_specs=[pl.BlockSpec((tile_r, cols), lambda i: (i, 0))],
        out_specs=pl.BlockSpec((tile_r, cols), lambda i: (i, 0)),
        compiler_params=pltpu.CompilerParams(
            dimension_semantics=("parallel",)  # dual-TC sharding on v7x
        ),
        cost_estimate=pl.CostEstimate(
            flops=0,
            transcendentals=0,
            bytes_accessed=2 * total * itemsize,
        ),
        # Donating the input buffer avoids allocating a second HBM tensor;
        # only enable when the caller no longer needs `x` afterwards.
        input_output_aliases=({0: 0} if donate_input else {}),
    )(slab)

    # Final view to (batch, *outer_shape): pure metadata, no data movement.
    return out2d.reshape(batch, *outer_shape)


if __name__ == "__main__":
    key = jax.random.PRNGKey(0)
    k1, k2 = jax.random.split(key)

    # --- Case 1: typical mmdVAE usage: Linear output (batch, 4*8*8) -> (4,8,8)
    batch = 2
    outer_shape = (4, 8, 8)
    feat = math.prod(outer_shape)
    x = jax.random.normal(k1, (batch, feat), dtype=jnp.float32)

    y_ref = x.reshape(batch, *outer_shape)

    # Recommended path: zero-cost view (no kernel, no HBM traffic).
    y_view = jax.block_until_ready(pallas_reshape(x, outer_shape))
    assert y_view.shape == (batch, *outer_shape)
    assert y_view.dtype == x.dtype
    assert jnp.array_equal(y_view, y_ref)

    # Materialized-copy path: exercises the tiled Pallas kernel.
    y_copy = jax.block_until_ready(
        pallas_reshape_materialized(x, outer_shape)
    )
    assert y_copy.shape == (batch, *outer_shape)
    assert y_copy.dtype == x.dtype
    assert jnp.array_equal(y_copy, y_ref)

    # --- Case 2: slightly larger input, small max_tile_bytes to exercise the
    # multi-tile pipelined grid (4 tiles of (32, 2048) f32 = 256 KiB each).
    batch2 = 64
    outer_shape2 = (64, 64)
    feat2 = math.prod(outer_shape2)
    x2 = jax.random.normal(k2, (batch2, feat2), dtype=jnp.float32)

    y2_ref = x2.reshape(batch2, *outer_shape2)
    y2 = jax.block_until_ready(
        pallas_reshape_materialized(x2, outer_shape2, max_tile_bytes=256 * 1024)
    )
    assert y2.shape == (batch2, *outer_shape2)
    assert jnp.array_equal(y2, y2_ref)

    print("KERNEL_OK")
</pallas_src>

<mosaic_0001>
module attributes {stable_mosaic.version = 11 : i64} {
  func.func @_copy_kernel(%arg0: i32, %arg1: memref<1x512xf32, #tpu.memory_space<vmem>>, %arg2: memref<1x512xf32, #tpu.memory_space<vmem>>) attributes {dimension_semantics = [#tpu.dimension_semantics<parallel>], iteration_bounds = array<i64: 1>, scalar_prefetch = 0 : i64, scratch_operands = 0 : i64, tpu.core_type = #tpu.core_type<tc>, window_params = [{transform_indices = @transform_0, window_bounds = array<i64: 1, 512>}, {transform_indices = @transform_1, window_bounds = array<i64: 1, 512>}]} {
    %c0 = arith.constant 0 : index
    %c0_0 = arith.constant 0 : index
    %0 = vector.load %arg1[%c0, %c0_0] : memref<1x512xf32, #tpu.memory_space<vmem>>, vector<1x512xf32>
    %c0_1 = arith.constant 0 : index
    %c0_2 = arith.constant 0 : index
    %1 = vector.load %arg2[%c0_1, %c0_2] : memref<1x512xf32, #tpu.memory_space<vmem>>, vector<1x512xf32>
    tpu.vector_store %arg2[%c0_1, %c0_2], %0 {strides = array<i32>} : memref<1x512xf32, #tpu.memory_space<vmem>>, vector<1x512xf32>,
    return
  }
  func.func @transform_0(%arg0: i32) -> (i32, i32) {
    %c0_i32 = arith.constant 0 : i32
    %c0_i32_0 = arith.constant 0 : i32
    return %arg0, %c0_i32 : i32, i32
  }
  func.func @transform_1(%arg0: i32) -> (i32, i32) {
    %c0_i32 = arith.constant 0 : i32
    %c0_i32_0 = arith.constant 0 : i32
    return %arg0, %c0_i32 : i32, i32
  }
}

</mosaic_0001>

<bundles_post_ra>
// kernel: tpu_custom_call.1
= control target key start
LH: loop header
LB: loop body
LE: loop exit
PB: predicated region body
PF: predicated region fallthrough
CT: control target
= control target key end

     0   :  { %6 = vsyncpa [#allocation3], 0  ;;  %s106_s0 = inlined_call_operand.hbm [shape: f32[1,512], index: 0, kind: input, shape index: {}]   ;;  %s107_s1 = inlined_call_operand.hbm [shape: f32[1,512], index: 1, kind: output, shape index: {}]  }
   0x1   :  { %7 = vsyncpa [#allocation4], 0  ;;  %s88_s6 = smov [#allocation2]  }
   0x2   :  { %s14_s7 = sshll.u32 %s88_s6, 4  ;;  %s15_s7 = int_to_ptr.vmem [resolvable:$true] %s14_s7 }
   0x3   :  { %s52_s8 = scalar_lea.vmem %s15_s7, 64  ;;  %p57_p1 = scmp.lt.s32.totalorder %s15_s7, %s15_s7 }
   0x4   :  { %p53_p0 = scmp.ne.s32.totalorder %s15_s7, %s52_s8  ;;  %p58_p2 = scmp.lt.s32.totalorder %s52_s8, %s52_s8 }
   0x6   :  { %p59_p3 = por %p58_p2, %p57_p1 }
   0x8   :  { %p60_p4 = pnand %p59_p3, %p53_p0 }
   0xa   :  { %63 = shalt.err (!%p60_p4)
}
   0xb   :  { %17 = dma.hbm_to_vmem [thread:$0]  %s106_s0, 64, %s15_s7, [#allocation3]  }
   0xc   :  { %84 = dma.done.wait [#allocation3], 64  }
   0xd   :  { %85 = vsyncadd [#allocation3], 4294967232  ;;  %v22_v0 = vlaneseq  ;;  %s89_s11 = smov [#allocation5]   ;;  %v21_v1 = vld [vmem:[#allocation2] sm:$0xf] }
   0xe   :  { %s33_s12 = sshll.u32 %s89_s11, 4  ;;  %s34_s12 = int_to_ptr.vmem [resolvable:$true] %s33_s12 }
   0xf   :  { %vm24_vm0 = vcmp.lt.s32.totalorder %v22_v0, 512  ;;  %s64_s13 = scalar_lea.vmem %s34_s12, 64  ;;  %p69_p6 = scmp.lt.s32.totalorder %s34_s12, %s34_s12 }
  0x10   :  { %26 = vst.msk [vmem:[#allocation5] sm:$0xf] %vm24_vm0, %v21_v1  ;;  %p65_p5 = scmp.ne.s32.totalorder %s34_s12, %s64_s13  ;;  %p70_p7 = scmp.lt.s32.totalorder %s64_s13, %s64_s13 }
  0x12   :  { %p71_p8 = por %p70_p7, %p69_p6 }
  0x14   :  { %p72_p9 = pnand %p71_p8, %p65_p5 }
  0x16   :  { %75 = shalt.err (!%p72_p9)
}
  0x17   :  { %36 = dma.vmem_to_hbm [thread:$0]  %s34_s12, 64, %s107_s1, [#allocation4]  }
  0x18   :  { %86 = dma.done.wait [#allocation4], 64  }
  0x19   :  { %87 = vsyncadd [#allocation4], 4294967232 }
  0x1a   :  { %40 = vsyncpa [#allocation3], 1 }
  0x1b   :  { %41 = vsyncpa [#allocation4], 1 }

</bundles_post_ra>
